<compile_context>
chip_gen: v5e
topology: v5e:2x2
jax: 0.10.0
libtpu: 0.0.40
codegen_flags: <defaults>
</compile_context>

<pallas_src>
import functools
import math

import jax
import jax.numpy as jnp
from jax.experimental import pallas as pl
from jax.experimental.pallas import tpu as pltpu

EXPANSION = 2          # Bottleneck.expansion
SEPARABLE_ALL = False  # conv1/conv3 = nn.Conv2d(kernel_size=1, bias=True)
BN_EPS = 1e-5


# ----------------------------------------------------------------------------
# Kernel: fused Bottleneck forward for one image, layout (channels, H*W).
# ----------------------------------------------------------------------------
def bottleneck_kernel(x_ref, mask_ref, pv_ref, w1_ref, wdw_ref, w3_ref, o_ref,
                      *, n_in, cp, n_out, H, W):
    L = H * W
    x = x_ref[0]                                 # (Cin, L), L on lanes
    pv = pv_ref[...]                             # (Cmax, 9) packed per-channel params

    # ---- bn1 (folded) + relu (f32 VPU) --------------------------------------
    h = jnp.maximum(x * pv[:n_in, 0:1] + pv[:n_in, 1:2], 0.0)

    # ---- conv1 ∘ ghost-primary-1x1 ∘ bnp (pre-fused) : bf16 MXU, f32 acc ----
    x1 = jnp.dot(w1_ref[...], h.astype(jnp.bfloat16),
                 preferred_element_type=jnp.float32)            # (cp, L)
    x1 = jnp.maximum(x1 + pv[:cp, 2:3], 0.0)     # padded rows stay exactly 0

    # ---- ghost cheap op: depthwise 3x3 (pad=1) via lane rolls ---------------
    # Per-tap boundary masks are precomputed (channel-independent, (1, L)).
    wdw = wdw_ref[...]                           # (cp, 9), bnc scale pre-folded
    masks = mask_ref[...]                        # (16, L) f32, rows 0..8 used
    acc = x1 * wdw[:, 4:5]                       # center tap initializes acc
    t = 0
    for dy in (-1, 0, 1):
        for dx in (-1, 0, 1):
            if (dy, dx) != (0, 0):
                shift = (-(dy * W + dx)) % L     # static, non-negative
                tap = pltpu.roll(x1, shift=shift, axis=1)
                acc = acc + tap * masks[t:t + 1, :] * wdw[:, t:t + 1]
            t += 1
    x2 = jnp.maximum(acc + pv[:cp, 7:8], 0.0)    # bnc shift + relu

    # ---- bn3 + relu per split (no concat of activations in channel order) ---
    g1 = jnp.maximum(x1 * pv[:cp, 3:4] + pv[:cp, 4:5], 0.0)
    g2 = jnp.maximum(x2 * pv[:cp, 5:6] + pv[:cp, 6:7], 0.0)
    # conv3 as ONE matmul: stack splits along sublanes (K = 2*cp), bf16 MXU.
    g = jnp.concatenate([g1.astype(jnp.bfloat16), g2.astype(jnp.bfloat16)],
                        axis=0)                                   # (2cp, L)
    y3 = (jnp.dot(w3_ref[...], g, preferred_element_type=jnp.float32)
          + pv[:n_out, 8:9])

    # ---- residual add (re-read x_ref -> short live range) -------------------
    o_ref[0] = y3 + x_ref[0]


# ----------------------------------------------------------------------------
# Wrapper: parameter fusion/packing + pallas_call (grid over batch).
# ----------------------------------------------------------------------------
def bottleneck_forward(x_nchw, P):
    N, c_in, H, W = x_nchw.shape
    planes = P["w1"].shape[1]
    init_c = P["wp"].shape[1]
    new_c = P["wdw"].shape[2]
    c_out = P["w3"].shape[1]
    nc2 = planes - init_c                       # cheap-op channels actually used
    assert c_out == c_in, "residual add requires inplanes == planes * expansion"
    assert 0 < nc2 <= new_c
    L = H * W

    # Pad intermediate channel dims to a full 16-sublane group (bf16 packing).
    cp = max(16, -(-max(init_c, nc2) // 16) * 16)
    cmax = max(c_in, c_out, cp)

    # ---- algebraic fusion + packing (one-off XLA work outside the kernel) ---
    # conv1 (w1, b1) ∘ primary 1x1 (wp) ∘ bnp scale/shift:
    w1f = (P["w1"] @ P["wp"]) * P["bnp_s"][None, :]              # (Cin, init_c)
    b1f = (P["b1"] @ P["wp"]) * P["bnp_s"] + P["bnp_b"]          # (init_c,)
    w1fT = jnp.pad(w1f.T, ((0, cp - init_c), (0, 0))).astype(jnp.bfloat16)
    # depthwise taps (bnc scale folded), only the channels kept by [:planes]:
    wdw = (P["wdw"][:, :, :nc2].reshape(9, nc2).T
           * P["bnc_s"][:nc2][:, None])                          # (nc2, 9)
    wdw = jnp.pad(wdw, ((0, cp - nc2), (0, 0)))                  # (cp, 9), f32
    # conv3: split rows of w3 (x1 part / x2 part), concat into ONE weight:
    w3aT = jnp.pad(P["w3"][:init_c, :].T, ((0, 0), (0, cp - init_c)))
    w3bT = jnp.pad(P["w3"][init_c:planes, :].T, ((0, 0), (0, cp - nc2)))
    w3T = jnp.concatenate([w3aT, w3bT], axis=1).astype(jnp.bfloat16)  # (Cout, 2cp)

    def col(v):
        return jnp.pad(v, (0, cmax - v.shape[0]))
    pvec = jnp.stack(
        [col(P["bn1_s"]), col(P["bn1_b"]), col(b1f),
         col(P["bn3_s"][:init_c]), col(P["bn3_b"][:init_c]),
         col(P["bn3_s"][init_c:planes]), col(P["bn3_b"][init_c:planes]),
         col(P["bnc_b"][:nc2]), col(P["b3"])], axis=1)           # (cmax, 9)

    # Precomputed per-tap boundary masks (channel-independent): no in-kernel
    # integer div/mod, (16, L) f32 stays resident across the whole grid.
    hw = jnp.arange(L, dtype=jnp.int32)
    row_i = hw // W
    col_i = hw % W
    tap_rows = []
    for dy in (-1, 0, 1):
        for dx in (-1, 0, 1):
            m = jnp.ones((L,), jnp.float32)
            if dy == -1:
                m = m * (row_i >= 1)
            elif dy == 1:
                m = m * (row_i < H - 1)
            if dx == -1:
                m = m * (col_i >= 1)
            elif dx == 1:
                m = m * (col_i < W - 1)
            tap_rows.append(m)
    masks = jnp.pad(jnp.stack(tap_rows, axis=0), ((0, 16 - 9), (0, 0)))  # (16, L)

    # Zero-copy view: contiguous NCHW -> (N, C, H*W). No HBM transpose needed;
    # the kernel grids over N and sees each image lane-dense.
    x3d = x_nchw.reshape(N, c_in, L)

    kernel = functools.partial(bottleneck_kernel, n_in=c_in, cp=cp,
                               n_out=c_out, H=H, W=W)

    out3d = pl.pallas_call(
        kernel,
        out_shape=jax.ShapeDtypeStruct((N, c_out, L), jnp.float32),
        grid_spec=pltpu.PrefetchScalarGridSpec(
            num_scalar_prefetch=0,
            grid=(N,),                           # one image per step, parallel
            in_specs=[
                pl.BlockSpec((1, c_in, L), lambda n: (n, 0, 0)),
                pl.BlockSpec((16, L), lambda n: (0, 0)),
                pl.BlockSpec((cmax, 9), lambda n: (0, 0)),
                pl.BlockSpec((cp, c_in), lambda n: (0, 0)),
                pl.BlockSpec((cp, 9), lambda n: (0, 0)),
                pl.BlockSpec((c_out, 2 * cp), lambda n: (0, 0)),
            ],
            out_specs=pl.BlockSpec((1, c_out, L), lambda n: (n, 0, 0)),
        ),
        compiler_params=pltpu.CompilerParams(
            dimension_semantics=("parallel",)),
    )(x3d, masks, pvec, w1fT, wdw, w3T)

    # TODO(synk): for production-sized images, split the H*W lane axis into
    # image-aligned strips of whole rows (multiple of 128, sized to the v7x
    # 64 MiB / v5e 16 MiB scoped-VMEM budgets) — the roll+mask scheme then
    # still needs zero halo traffic as long as strips cover whole images.
    return out3d.reshape(N, c_out, H, W)


# ----------------------------------------------------------------------------
# Deterministic parameter construction (shapes from Bottleneck.__init__)
# ----------------------------------------------------------------------------
def init_params(key, inplanes, planes, expansion):
    init_c = math.ceil(planes / 2)          # GhostModule init_channels
    new_c = init_c * 1                      # GhostModule new_channels (ratio=2)
    cout = int(planes * expansion)
    keys = iter(jax.random.split(key, 24))

    def bn_fold(c):
        gamma = 1.0 + 0.1 * jax.random.normal(next(keys), (c,), jnp.float32)
        beta = 0.1 * jax.random.normal(next(keys), (c,), jnp.float32)
        mean = 0.1 * jax.random.normal(next(keys), (c,), jnp.float32)
        var = 0.5 + jax.random.uniform(next(keys), (c,), jnp.float32)
        scale = gamma / jnp.sqrt(var + BN_EPS)
        return scale, beta - mean * scale

    P = {}
    P["bn1_s"], P["bn1_b"] = bn_fold(inplanes)
    # conv1: nn.Conv2d(inplanes, planes, 1, bias=True), weight stored (Cin, Cout)
    P["w1"] = 0.2 * jax.random.normal(next(keys), (inplanes, planes), jnp.float32)
    P["b1"] = 0.1 * jax.random.normal(next(keys), (planes,), jnp.float32)
    # GhostModule primary: Conv2d(planes, init_c, 1, bias=False) + BN
    P["wp"] = 0.2 * jax.random.normal(next(keys), (planes, init_c), jnp.float32)
    P["bnp_s"], P["bnp_b"] = bn_fold(init_c)
    # GhostModule cheap op: depthwise Conv2d(init_c, new_c, 3, pad=1, groups=init_c) + BN
    P["wdw"] = 0.2 * jax.random.normal(next(keys), (3, 3, new_c), jnp.float32)
    P["bnc_s"], P["bnc_b"] = bn_fold(new_c)
    # bn3
    P["bn3_s"], P["bn3_b"] = bn_fold(planes)
    # conv3: nn.Conv2d(planes, planes*expansion, 1, bias=True)
    P["w3"] = 0.2 * jax.random.normal(next(keys), (planes, cout), jnp.float32)
    P["b3"] = 0.1 * jax.random.normal(next(keys), (cout,), jnp.float32)
    return P


# ----------------------------------------------------------------------------
# Pure-JAX reference (unfused, f32, NHWC) for correctness check only.
# ----------------------------------------------------------------------------
def reference(x_nhwc, P):
    h = jnp.maximum(x_nhwc * P["bn1_s"] + P["bn1_b"], 0.0)
    y1 = jnp.einsum("nhwc,cd->nhwd", h, P["w1"]) + P["b1"]
    p = jnp.einsum("nhwc,cd->nhwd", y1, P["wp"])
    p = jnp.maximum(p * P["bnp_s"] + P["bnp_b"], 0.0)
    dw_w = P["wdw"][:, :, None, :]            # HWIO, I=1 (depthwise)
    x2 = jax.lax.conv_general_dilated(
        p, dw_w, window_strides=(1, 1), padding="SAME",
        dimension_numbers=("NHWC", "HWIO", "NHWC"),
        feature_group_count=p.shape[-1])
    x2 = jnp.maximum(x2 * P["bnc_s"] + P["bnc_b"], 0.0)
    planes = P["w1"].shape[1]
    cat = jnp.concatenate([p, x2], axis=-1)[..., :planes]
    g = jnp.maximum(cat * P["bn3_s"] + P["bn3_b"], 0.0)
    y3 = jnp.einsum("nhwc,cd->nhwd", g, P["w3"]) + P["b3"]
    return y3 + x_nhwc


# ----------------------------------------------------------------------------
if __name__ == "__main__":
    N, inplanes, H, W = 2, 8, 16, 16
    planes = 4                                  # cout = planes * EXPANSION == inplanes
    key = jax.random.PRNGKey(0)
    kx, kp = jax.random.split(key)

    # PyTorch-style NCHW input (the kernel wrapper handles layout internally).
    x_nchw = jax.random.normal(kx, (N, inplanes, H, W), jnp.float32)
    P = init_params(kp, inplanes, planes, EXPANSION)

    out_nchw = bottleneck_forward(x_nchw, P)
    out_nchw = jax.block_until_ready(out_nchw)
    assert out_nchw.shape == (N, int(planes * EXPANSION), H, W)

    ref_nhwc = reference(jnp.transpose(x_nchw, (0, 2, 3, 1)), P)
    out_nhwc = jnp.transpose(out_nchw, (0, 2, 3, 1))
    max_err = float(jnp.max(jnp.abs(out_nhwc - ref_nhwc)))
    # MXU operands are bf16 (f32 accumulation), so the tolerance is bf16-level.
    assert jnp.allclose(out_nhwc, ref_nhwc, atol=1e-1, rtol=2e-2), max_err

    # TODO(synk): BatchNorm is implemented in inference mode (running stats);
    # PyTorch training-mode batch statistics are not reproduced.
    print("KERNEL_OK")
</pallas_src>

<mosaic_0001>
module attributes {stable_mosaic.version = 11 : i64} {
  func.func @bottleneck_kernel(%arg0: i32, %arg1: memref<1x8x256xf32, #tpu.memory_space<vmem>>, %arg2: memref<16x256xf32, #tpu.memory_space<vmem>>, %arg3: memref<16x9xf32, #tpu.memory_space<vmem>>, %arg4: memref<16x8xbf16, #tpu.memory_space<vmem>>, %arg5: memref<16x9xf32, #tpu.memory_space<vmem>>, %arg6: memref<8x32xbf16, #tpu.memory_space<vmem>>, %arg7: memref<1x8x256xf32, #tpu.memory_space<vmem>>) attributes {dimension_semantics = [#tpu.dimension_semantics<parallel>], iteration_bounds = array<i64: 2>, scalar_prefetch = 0 : i64, scratch_operands = 0 : i64, tpu.core_type = #tpu.core_type<tc>, window_params = [{transform_indices = @transform_0, window_bounds = array<i64: 1, 8, 256>}, {pipeline_mode = #tpu.pipeline_mode<synchronous>, transform_indices = @transform_1, window_bounds = array<i64: 16, 256>}, {pipeline_mode = #tpu.pipeline_mode<synchronous>, transform_indices = @transform_2, window_bounds = array<i64: 16, 9>}, {pipeline_mode = #tpu.pipeline_mode<synchronous>, transform_indices = @transform_3, window_bounds = array<i64: 16, 8>}, {pipeline_mode = #tpu.pipeline_mode<synchronous>, transform_indices = @transform_4, window_bounds = array<i64: 16, 9>}, {pipeline_mode = #tpu.pipeline_mode<synchronous>, transform_indices = @transform_5, window_bounds = array<i64: 8, 32>}, {transform_indices = @transform_6, window_bounds = array<i64: 1, 8, 256>}]} {
    %c0 = arith.constant 0 : index
    %c0_0 = arith.constant 0 : index
    %c0_1 = arith.constant 0 : index
    %0 = vector.load %arg1[%c0, %c0_0, %c0_1] : memref<1x8x256xf32, #tpu.memory_space<vmem>>, vector<1x8x256xf32>
    %1 = vector.shape_cast %0 : vector<1x8x256xf32> to vector<8x256xf32>
    %c0_2 = arith.constant 0 : index
    %c0_3 = arith.constant 0 : index
    %2 = vector.load %arg3[%c0_2, %c0_3] : memref<16x9xf32, #tpu.memory_space<vmem>>, vector<16x9xf32>
    %3 = vector.extract_strided_slice %2 {offsets = [0, 0], sizes = [8, 1], strides = [1, 1]} : vector<16x9xf32> to vector<8x1xf32>
    %4 = vector.broadcast %3 : vector<8x1xf32> to vector<8x256xf32>
    %5 = arith.mulf %1, %4 : vector<8x256xf32>
    %6 = vector.extract_strided_slice %2 {offsets = [0, 1], sizes = [8, 1], strides = [1, 1]} : vector<16x9xf32> to vector<8x1xf32>
    %7 = vector.broadcast %6 : vector<8x1xf32> to vector<8x256xf32>
    %8 = arith.addf %5, %7 : vector<8x256xf32>
    %cst = arith.constant 0.000000e+00 : f32
    %9 = vector.broadcast %cst : f32 to vector<8x256xf32>
    %10 = arith.maximumf %8, %9 : vector<8x256xf32>
    %c0_4 = arith.constant 0 : index
    %c0_5 = arith.constant 0 : index
    %11 = vector.load %arg4[%c0_4, %c0_5] : memref<16x8xbf16, #tpu.memory_space<vmem>>, vector<16x8xbf16>
    %12 = arith.truncf %10 : vector<8x256xf32> to vector<8x256xbf16>
    %cst_6 = arith.constant dense<0.000000e+00> : vector<16x256xf32>
    %13 = tpu.matmul %11, %12, %cst_6 {dimension_numbers = #tpu.dot_dimension_numbers<[1], [0], [0], [1], [0, 0, 1, 1], [], []>} : vector<16x8xbf16>, vector<8x256xbf16>, vector<16x256xf32> -> vector<16x256xf32>
    %14 = vector.extract_strided_slice %2 {offsets = [0, 2], sizes = [16, 1], strides = [1, 1]} : vector<16x9xf32> to vector<16x1xf32>
    %15 = vector.broadcast %14 : vector<16x1xf32> to vector<16x256xf32>
    %16 = arith.addf %13, %15 : vector<16x256xf32>
    %cst_7 = arith.constant 0.000000e+00 : f32
    %17 = vector.broadcast %cst_7 : f32 to vector<16x256xf32>
    %18 = arith.maximumf %16, %17 : vector<16x256xf32>
    %c0_8 = arith.constant 0 : index
    %c0_9 = arith.constant 0 : index
    %19 = vector.load %arg5[%c0_8, %c0_9] : memref<16x9xf32, #tpu.memory_space<vmem>>, vector<16x9xf32>
    %c0_10 = arith.constant 0 : index
    %c0_11 = arith.constant 0 : index
    %20 = vector.load %arg2[%c0_10, %c0_11] : memref<16x256xf32, #tpu.memory_space<vmem>>, vector<16x256xf32>
    %21 = vector.extract_strided_slice %19 {offsets = [0, 4], sizes = [16, 1], strides = [1, 1]} : vector<16x9xf32> to vector<16x1xf32>
    %22 = vector.broadcast %21 : vector<16x1xf32> to vector<16x256xf32>
    %23 = arith.mulf %18, %22 : vector<16x256xf32>
    %c17_i32 = arith.constant 17 : i32
    %24 = tpu.dynamic_rotate %18 by %c17_i32 dim 1 : vector<16x256xf32>, i32 -> vector<16x256xf32>
    %25 = vector.extract_strided_slice %20 {offsets = [0, 0], sizes = [1, 256], strides = [1, 1]} : vector<16x256xf32> to vector<1x256xf32>
    %26 = vector.broadcast %25 : vector<1x256xf32> to vector<16x256xf32>
    %27 = arith.mulf %24, %26 : vector<16x256xf32>
    %28 = vector.extract_strided_slice %19 {offsets = [0, 0], sizes = [16, 1], strides = [1, 1]} : vector<16x9xf32> to vector<16x1xf32>
    %29 = vector.broadcast %28 : vector<16x1xf32> to vector<16x256xf32>
    %30 = arith.mulf %27, %29 : vector<16x256xf32>
    %31 = arith.addf %23, %30 : vector<16x256xf32>
    %c16_i32 = arith.constant 16 : i32
    %32 = tpu.dynamic_rotate %18 by %c16_i32 dim 1 : vector<16x256xf32>, i32 -> vector<16x256xf32>
    %33 = vector.extract_strided_slice %20 {offsets = [1, 0], sizes = [1, 256], strides = [1, 1]} : vector<16x256xf32> to vector<1x256xf32>
    %34 = vector.broadcast %33 : vector<1x256xf32> to vector<16x256xf32>
    %35 = arith.mulf %32, %34 : vector<16x256xf32>
    %36 = vector.extract_strided_slice %19 {offsets = [0, 1], sizes = [16, 1], strides = [1, 1]} : vector<16x9xf32> to vector<16x1xf32>
    %37 = vector.broadcast %36 : vector<16x1xf32> to vector<16x256xf32>
    %38 = arith.mulf %35, %37 : vector<16x256xf32>
    %39 = arith.addf %31, %38 : vector<16x256xf32>
    %c15_i32 = arith.constant 15 : i32
    %40 = tpu.dynamic_rotate %18 by %c15_i32 dim 1 : vector<16x256xf32>, i32 -> vector<16x256xf32>
    %41 = vector.extract_strided_slice %20 {offsets = [2, 0], sizes = [1, 256], strides = [1, 1]} : vector<16x256xf32> to vector<1x256xf32>
    %42 = vector.broadcast %41 : vector<1x256xf32> to vector<16x256xf32>
    %43 = arith.mulf %40, %42 : vector<16x256xf32>
    %44 = vector.extract_strided_slice %19 {offsets = [0, 2], sizes = [16, 1], strides = [1, 1]} : vector<16x9xf32> to vector<16x1xf32>
    %45 = vector.broadcast %44 : vector<16x1xf32> to vector<16x256xf32>
    %46 = arith.mulf %43, %45 : vector<16x256xf32>
    %47 = arith.addf %39, %46 : vector<16x256xf32>
    %c1_i32 = arith.constant 1 : i32
    %48 = tpu.dynamic_rotate %18 by %c1_i32 dim 1 : vector<16x256xf32>, i32 -> vector<16x256xf32>
    %49 = vector.extract_strided_slice %20 {offsets = [3, 0], sizes = [1, 256], strides = [1, 1]} : vector<16x256xf32> to vector<1x256xf32>
    %50 = vector.broadcast %49 : vector<1x256xf32> to vector<16x256xf32>
    %51 = arith.mulf %48, %50 : vector<16x256xf32>
    %52 = vector.extract_strided_slice %19 {offsets = [0, 3], sizes = [16, 1], strides = [1, 1]} : vector<16x9xf32> to vector<16x1xf32>
    %53 = vector.broadcast %52 : vector<16x1xf32> to vector<16x256xf32>
    %54 = arith.mulf %51, %53 : vector<16x256xf32>
    %55 = arith.addf %47, %54 : vector<16x256xf32>
    %c255_i32 = arith.constant 255 : i32
    %56 = tpu.dynamic_rotate %18 by %c255_i32 dim 1 : vector<16x256xf32>, i32 -> vector<16x256xf32>
    %57 = vector.extract_strided_slice %20 {offsets = [5, 0], sizes = [1, 256], strides = [1, 1]} : vector<16x256xf32> to vector<1x256xf32>
    %58 = vector.broadcast %57 : vector<1x256xf32> to vector<16x256xf32>
    %59 = arith.mulf %56, %58 : vector<16x256xf32>
    %60 = vector.extract_strided_slice %19 {offsets = [0, 5], sizes = [16, 1], strides = [1, 1]} : vector<16x9xf32> to vector<16x1xf32>
    %61 = vector.broadcast %60 : vector<16x1xf32> to vector<16x256xf32>
    %62 = arith.mulf %59, %61 : vector<16x256xf32>
    %63 = arith.addf %55, %62 : vector<16x256xf32>
    %c241_i32 = arith.constant 241 : i32
    %64 = tpu.dynamic_rotate %18 by %c241_i32 dim 1 : vector<16x256xf32>, i32 -> vector<16x256xf32>
    %65 = vector.extract_strided_slice %20 {offsets = [6, 0], sizes = [1, 256], strides = [1, 1]} : vector<16x256xf32> to vector<1x256xf32>
    %66 = vector.broadcast %65 : vector<1x256xf32> to vector<16x256xf32>
    %67 = arith.mulf %64, %66 : vector<16x256xf32>
    %68 = vector.extract_strided_slice %19 {offsets = [0, 6], sizes = [16, 1], strides = [1, 1]} : vector<16x9xf32> to vector<16x1xf32>
    %69 = vector.broadcast %68 : vector<16x1xf32> to vector<16x256xf32>
    %70 = arith.mulf %67, %69 : vector<16x256xf32>
    %71 = arith.addf %63, %70 : vector<16x256xf32>
    %c240_i32 = arith.constant 240 : i32
    %72 = tpu.dynamic_rotate %18 by %c240_i32 dim 1 : vector<16x256xf32>, i32 -> vector<16x256xf32>
    %73 = vector.extract_strided_slice %20 {offsets = [7, 0], sizes = [1, 256], strides = [1, 1]} : vector<16x256xf32> to vector<1x256xf32>
    %74 = vector.broadcast %73 : vector<1x256xf32> to vector<16x256xf32>
    %75 = arith.mulf %72, %74 : vector<16x256xf32>
    %76 = vector.extract_strided_slice %19 {offsets = [0, 7], sizes = [16, 1], strides = [1, 1]} : vector<16x9xf32> to vector<16x1xf32>
    %77 = vector.broadcast %76 : vector<16x1xf32> to vector<16x256xf32>
    %78 = arith.mulf %75, %77 : vector<16x256xf32>
    %79 = arith.addf %71, %78 : vector<16x256xf32>
    %c239_i32 = arith.constant 239 : i32
    %80 = tpu.dynamic_rotate %18 by %c239_i32 dim 1 : vector<16x256xf32>, i32 -> vector<16x256xf32>
    %81 = vector.extract_strided_slice %20 {offsets = [8, 0], sizes = [1, 256], strides = [1, 1]} : vector<16x256xf32> to vector<1x256xf32>
    %82 = vector.broadcast %81 : vector<1x256xf32> to vector<16x256xf32>
    %83 = arith.mulf %80, %82 : vector<16x256xf32>
    %84 = vector.extract_strided_slice %19 {offsets = [0, 8], sizes = [16, 1], strides = [1, 1]} : vector<16x9xf32> to vector<16x1xf32>
    %85 = vector.broadcast %84 : vector<16x1xf32> to vector<16x256xf32>
    %86 = arith.mulf %83, %85 : vector<16x256xf32>
    %87 = arith.addf %79, %86 : vector<16x256xf32>
    %88 = vector.extract_strided_slice %2 {offsets = [0, 7], sizes = [16, 1], strides = [1, 1]} : vector<16x9xf32> to vector<16x1xf32>
    %89 = vector.broadcast %88 : vector<16x1xf32> to vector<16x256xf32>
    %90 = arith.addf %87, %89 : vector<16x256xf32>
    %cst_12 = arith.constant 0.000000e+00 : f32
    %91 = vector.broadcast %cst_12 : f32 to vector<16x256xf32>
    %92 = arith.maximumf %90, %91 : vector<16x256xf32>
    %93 = vector.extract_strided_slice %2 {offsets = [0, 3], sizes = [16, 1], strides = [1, 1]} : vector<16x9xf32> to vector<16x1xf32>
    %94 = vector.broadcast %93 : vector<16x1xf32> to vector<16x256xf32>
    %95 = arith.mulf %18, %94 : vector<16x256xf32>
    %96 = vector.extract_strided_slice %2 {offsets = [0, 4], sizes = [16, 1], strides = [1, 1]} : vector<16x9xf32> to vector<16x1xf32>
    %97 = vector.broadcast %96 : vector<16x1xf32> to vector<16x256xf32>
    %98 = arith.addf %95, %97 : vector<16x256xf32>
    %cst_13 = arith.constant 0.000000e+00 : f32
    %99 = vector.broadcast %cst_13 : f32 to vector<16x256xf32>
    %100 = arith.maximumf %98, %99 : vector<16x256xf32>
    %101 = vector.extract_strided_slice %2 {offsets = [0, 5], sizes = [16, 1], strides = [1, 1]} : vector<16x9xf32> to vector<16x1xf32>
    %102 = vector.broadcast %101 : vector<16x1xf32> to vector<16x256xf32>
    %103 = arith.mulf %92, %102 : vector<16x256xf32>
    %104 = vector.extract_strided_slice %2 {offsets = [0, 6], sizes = [16, 1], strides = [1, 1]} : vector<16x9xf32> to vector<16x1xf32>
    %105 = vector.broadcast %104 : vector<16x1xf32> to vector<16x256xf32>
    %106 = arith.addf %103, %105 : vector<16x256xf32>
    %cst_14 = arith.constant 0.000000e+00 : f32
    %107 = vector.broadcast %cst_14 : f32 to vector<16x256xf32>
    %108 = arith.maximumf %106, %107 : vector<16x256xf32>
    %109 = arith.truncf %100 : vector<16x256xf32> to vector<16x256xbf16>
    %110 = arith.truncf %108 : vector<16x256xf32> to vector<16x256xbf16>
    %111 = tpu.concatenate %109, %110 in 0 : vector<16x256xbf16>, vector<16x256xbf16> -> vector<32x256xbf16>
    %c0_15 = arith.constant 0 : index
    %c0_16 = arith.constant 0 : index
    %112 = vector.load %arg6[%c0_15, %c0_16] : memref<8x32xbf16, #tpu.memory_space<vmem>>, vector<8x32xbf16>
    %cst_17 = arith.constant dense<0.000000e+00> : vector<8x256xf32>
    %113 = tpu.matmul %112, %111, %cst_17 {dimension_numbers = #tpu.dot_dimension_numbers<[1], [0], [0], [1], [0, 0, 1, 1], [], []>} : vector<8x32xbf16>, vector<32x256xbf16>, vector<8x256xf32> -> vector<8x256xf32>
    %114 = vector.extract_strided_slice %2 {offsets = [0, 8], sizes = [8, 1], strides = [1, 1]} : vector<16x9xf32> to vector<8x1xf32>
    %115 = vector.broadcast %114 : vector<8x1xf32> to vector<8x256xf32>
    %116 = arith.addf %113, %115 : vector<8x256xf32>
    %c0_18 = arith.constant 0 : index
    %c0_19 = arith.constant 0 : index
    %c0_20 = arith.constant 0 : index
    %117 = vector.load %arg1[%c0_18, %c0_19, %c0_20] : memref<1x8x256xf32, #tpu.memory_space<vmem>>, vector<1x8x256xf32>
    %118 = vector.shape_cast %117 : vector<1x8x256xf32> to vector<8x256xf32>
    %119 = arith.addf %116, %118 : vector<8x256xf32>
    %c0_21 = arith.constant 0 : index
    %c0_22 = arith.constant 0 : index
    %c0_23 = arith.constant 0 : index
    %120 = vector.load %arg7[%c0_21, %c0_22, %c0_23] : memref<1x8x256xf32, #tpu.memory_space<vmem>>, vector<1x8x256xf32>
    %121 = vector.shape_cast %120 : vector<1x8x256xf32> to vector<8x256xf32>
    %122 = vector.shape_cast %119 : vector<8x256xf32> to vector<1x8x256xf32>
    tpu.vector_store %arg7[%c0_21, %c0_22, %c0_23], %122 {strides = array<i32>} : memref<1x8x256xf32, #tpu.memory_space<vmem>>, vector<1x8x256xf32>,
    return
  }
  func.func @transform_0(%arg0: i32) -> (i32, i32, i32) {
    %c0_i32 = arith.constant 0 : i32
    %c0_i32_0 = arith.constant 0 : i32
    %c0_i32_1 = arith.constant 0 : i32
    return %arg0, %c0_i32, %c0_i32_0 : i32, i32, i32
  }
  func.func @transform_1(%arg0: i32) -> (i32, i32) {
    %c0_i32 = arith.constant 0 : i32
    %c0_i32_0 = arith.constant 0 : i32
    %c0_i32_1 = arith.constant 0 : i32
    return %c0_i32, %c0_i32_0 : i32, i32
  }
  func.func @transform_2(%arg0: i32) -> (i32, i32) {
    %c0_i32 = arith.constant 0 : i32
    %c0_i32_0 = arith.constant 0 : i32
    %c0_i32_1 = arith.constant 0 : i32
    return %c0_i32, %c0_i32_0 : i32, i32
  }
  func.func @transform_3(%arg0: i32) -> (i32, i32) {
    %c0_i32 = arith.constant 0 : i32
    %c0_i32_0 = arith.constant 0 : i32
    %c0_i32_1 = arith.constant 0 : i32
    return %c0_i32, %c0_i32_0 : i32, i32
  }
  func.func @transform_4(%arg0: i32) -> (i32, i32) {
    %c0_i32 = arith.constant 0 : i32
    %c0_i32_0 = arith.constant 0 : i32
    %c0_i32_1 = arith.constant 0 : i32
    return %c0_i32, %c0_i32_0 : i32, i32
  }
  func.func @transform_5(%arg0: i32) -> (i32, i32) {
    %c0_i32 = arith.constant 0 : i32
    %c0_i32_0 = arith.constant 0 : i32
    %c0_i32_1 = arith.constant 0 : i32
    return %c0_i32, %c0_i32_0 : i32, i32
  }
  func.func @transform_6(%arg0: i32) -> (i32, i32, i32) {
    %c0_i32 = arith.constant 0 : i32
    %c0_i32_0 = arith.constant 0 : i32
    %c0_i32_1 = arith.constant 0 : i32
    return %arg0, %c0_i32, %c0_i32_0 : i32, i32, i32
  }
}

</mosaic_0001>

<bundles_post_ra>
// kernel: tpu_custom_call.1
= control target key start
LH: loop header
LB: loop body
LE: loop exit
PB: predicated region body
PF: predicated region fallthrough
CT: control target
= control target key end

     0   :  { %11 = vsyncpa [#allocation3], 0  ;;  %s1904_s0 = inlined_call_operand.hbm [shape: f32[2,8,256], index: 0, kind: input, shape index: {}]   ;;  %s1905_s1 = inlined_call_operand.hbm [shape: f32[16,256], index: 1, kind: input, shape index: {}]   ;;  %s1906_s2 = inlined_call_operand.hbm [shape: f32[16,9], index: 2, kind: input, shape index: {}]   ;;  %s1907_s3 = inlined_call_operand.vmem [shape: bf16[16,8], index: 3, kind: input, shape index: {}]   ;;  %s1908_s4 = inlined_call_operand.hbm [shape: f32[16,9], index: 4, kind: input, shape index: {}]   ;;  %s1909_s5 = inlined_call_operand.vmem [shape: bf16[8,32], index: 5, kind: input, shape index: {}]   ;;  %s1910_s6 = inlined_call_operand.hbm [shape: f32[2,8,256], index: 6, kind: output, shape index: {}]  }
   0x1   :  { %13 = vsyncpa [#allocation3 + $0x1], 0 }
   0x2   :  { %14 = vsyncpa [#allocation6], 0 }
   0x3   :  { %15 = vsyncpa [#allocation9], 0 }
   0x4   :  { %16 = vsyncpa [#allocation4], 0 }
   0x5   :  { %18 = vsyncpa [#allocation4 + $0x1], 0  ;;  %s1368_s21 = smov 0   ;;  %s1370_s22 = smov 0  }
   0x6   :  { %s1372_s23 = smov 0   ;;  %s1374_s24 = smov 0  }
   0x7 LB: > { %s197_s27 = sshll.u32 %s1905_s1, 4  ;;  %s1392_s28 = sadd.s32 4294967295, %s1307_s24   ;;  %s1307_s24 = sphi %s1374_s24, %s1933_s24   ;;  %s1303_s23 = sphi %s1372_s23, %s1932_s23   ;;  %s1299_s22 = sphi %s1370_s22, %s1931_s22   ;;  %s1295_s21 = sphi %s1368_s21, %s1930_s21   ;;  %s198_s27 = int_to_ptr.hbm [resolvable:$true] %s197_s27 }
   0x8   : > { %p955_p0 = scmp.ge.s32.totalorder %s1307_s24, 1  ;;  %p45_p1 = scmp.eq.s32.totalorder %s1392_s28, 0 }
   0x9   : > { %p186_p2 = scmp.lt.s32.totalorder %s1307_s24, 3  ;;  %s1309_s30 = smov [#allocation5]  }
   0xa   : > { %s199_s7 = sshll.u32 %s1309_s30, 4  ;;  %s211_s10 = sshll.u32 %s1906_s2, 4  ;;  %s200_s7 = int_to_ptr.vmem [resolvable:$true] %s199_s7  ;;  %s212_s10 = int_to_ptr.hbm [resolvable:$true] %s211_s10 }
   0xb   : > { %p1397_p3 = pnand %p955_p0, %p186_p2  ;;  %s1310_s12 = smov [#allocation7]  }
   0xc   : > { %s213_s13 = sshll.u32 %s1310_s12, 4  ;;  %s1311_s14 = smov 256   ;;  %s214_s13 = int_to_ptr.vmem [resolvable:$true] %s213_s13 }
   0xd   : > { %p1001_p4 = pneg %p1397_p3  ;;  %s1312_s15 = smov 16  }
   0xe   : > { %s1313_s16 = smov 128   ;;  %s1314_s17 = smov 8  }
   0xf   : > { %p1409_p6 = pnand %p1001_p4, %p45_p1  ;;  %s228_s20 = sshll.u32 %s1908_s4, 4  ;;  %s229_s20 = int_to_ptr.hbm [resolvable:$true] %s228_s20 }
  0x10   : > { %s1315_s25 = smov [#allocation8]   ;;  %s1424_s30 = sadd.s32 1, %s1307_s24  }
  0x11   : > { %1004 = dma.hbm_to_vmem [thread:$0]  (!%p1409_p6), %s198_s27, 512, %s200_s7, [#allocation6], %s1311_s14, %s1311_s14, %s1312_s15  }
  0x12   : > { %1007 = dma.hbm_to_vmem [thread:$0]  (!%p1409_p6), %s212_s10, 256, %s214_s13, [#allocation6], %s1313_s16, %s1313_s16, %s1314_s17  }
  0x13   : > { %s230_s26 = sshll.u32 %s1315_s25, 4  ;;  %s954_s27 = sadd.s32 4294967294, %s1307_s24   ;;  %s231_s26 = int_to_ptr.vmem [resolvable:$true] %s230_s26 }
  0x14   : > { %1010 = dma.hbm_to_vmem [thread:$0]  (!%p1409_p6), %s229_s20, 256, %s231_s26, [#allocation9], %s1313_s16, %s1313_s16, %s1314_s17  }
  0x15   : > { %s31_s7 = sadd.s32 1, %s1303_s23  ;;  %s28_s8 = ssub.s32 %s1307_s24, %s1424_s30 }
  0x16   : > { %p38_p7 = scmp.ne.s32.totalorder %s1303_s23, %s1299_s22  ;;  %p29_p8 = scmp.eq.s32.totalorder %s28_s8, 0 }
  0x17   : > { %p39_p9 = scmp.eq.s32.totalorder %s1307_s24, 0  ;;  %p44_p10 = scmp.ne.s32.totalorder %s1299_s22, %s1295_s21 }
  0x18   : > { %p173_p11 = scmp.eq.s32.totalorder %s1392_s28, 1  ;;  %p179_p0 = scmp.eq.s32.totalorder %s954_s27, 1 }
  0x19   : > { %s1436_s9 = scalar_select %p29_p8, %s1303_s23, %s31_s7  }
  0x1a   : > { %p1440_p12 = por %p45_p1, %p44_p10  ;;  %p1444_p13 = por %p173_p11, %p38_p7 }
  0x1b   : > { %p40_p2 = por %p39_p9, %p38_p7  ;;  %s247_s12 = sand.u32 1, %s1303_s23  }
  0x1c   : > { %p1449_p4 = por %p179_p0, %p44_p10  ;;  %p1022_p6 = scmp.lt.s32.totalorder %s1307_s24, 2 }
  0x1d   : > { %s960_s14 = sshll.u32 %s247_s12, 4  ;;  %s982_s15 = sshll.u32 %s1307_s24, 4 }
  0x1e   : > { %s256_s18 = scalar_lea.hbm %s1904_s0, %s982_s15  ;;  %s251_s20 = scalar_lea.vmem [#allocation2], %s960_s14 }
  0x1f   : > { %s258_s19 = sshll.u32 %s256_s18, 4  ;;  %s260_s25 = sshll.u32 %s251_s20, 4  ;;  %s259_s19 = int_to_ptr.hbm [resolvable:$true] %s258_s19  ;;  %s261_s25 = int_to_ptr.vmem [resolvable:$true] %s260_s25 }
  0x20   : > { %p1458_p8 = pnand %p1022_p6, %p40_p2  ;;  %s248_s27 = scalar_lea.sflag [#allocation3], %s247_s12 }
  0x21   : > { %s1203_s7 = sshra.s32 %s259_s19, 4  ;;  %s1210_s14 = scalar_lea.hbm %s1904_s0, 32  ;;  %s1204_s7 = int_to_ptr.hbm [resolvable:$true] %s1203_s7 }
  0x22   : > { %s1205_s8 = scalar_lea.hbm %s1204_s7, 16  ;;  %p1207_p9 = pneg %p1458_p8 }
  0x23   : > { %p1206_p7 = scmp.ne.s32.totalorder %s1204_s7, %s1205_s8  ;;  %p1211_p0 = scmp.lt.s32.totalorder %s1204_s7, %s1904_s0 }
  0x24   : > { %p1212_p2 = scmp.lt.s32.totalorder %s1210_s14, %s1205_s8 }
  0x25   : > { %p1208_p10 = pnand %p1207_p9, %p1206_p7 }
  0x26   : > { %p1213_p6 = por %p1212_p2, %p1211_p0 }
  0x27   : > { %p1209_p11 = pneg %p1208_p10 }
  0x29   : > { %p1214_p5 = pnand %p1213_p6, %p1209_p11 }
  0x2b   : > { %1217 = shalt.err (!%p1214_p5)
}
  0x2c   : > { %1014 = dma.hbm_to_vmem [thread:$0]  (!%p1458_p8), %s259_s19, 256, %s261_s25, %s248_s27  }
  0x2d   : > { %269 = sbr.rel (%p1397_p3) target bundleno = 712 (0x2c8), region = 44  ;;  %s1475_s12 = sand.u32 (!%p1397_p3), 1, %s1299_s22  }
  0x2e   : > { %s964_s20 = sshll.u32 (!%p1397_p3), %s1475_s12, 4  ;;  %s272_s15 = scalar_lea.sflag (!%p1397_p3), [#allocation3], %s1475_s12 }
  0x2f   : > { %s1481_s7 = scalar_lea.vmem (!%p1397_p3), [#allocation2], %s964_s20 }
  0x32   : > { %1278 = dma.done.wait (%p1440_p12), %s272_s15, 256  }
  0x33   : > { %1280 = vsyncadd (%p1440_p12), %s272_s15, 4294967040 }
  0x34   : > { %1282 = dma.done.wait (%p45_p1), [#allocation6], 768  }
  0x35   : > { %1284 = vsyncadd (%p45_p1), [#allocation6], 4294966528 }
  0x36   : > { %1286 = dma.done.wait (%p45_p1), [#allocation9], 256  }
  0x37   : > { %1288 = vsyncadd (%p45_p1), [#allocation9], 4294967040  ;;  %v1316_v0 = vmov 0   ;;  %v1495_v1 = vld [vmem:[#allocation7] sm:$0xff]  ;;  %v1317_v2 = vmov 1   ;;  %v401_v3 = vld [vmem:[#allocation8] sm:$0xff]  ;;  %v429_v58 = vlaneseq }
  0x38   : > { %1083 = vset.pattern.permute.xlu0 %v1316_v0  ;;  %v1318_v4 = vmov 2   ;;  %v1319_v5 = vmov 4   ;;  %v402_v6 = vld [vmem:[#allocation8 + $0x8] sm:$0xff]  ;;  %v1501_v7 = vld [vmem:[#allocation7 + $0x8] sm:$0xff]  ;;  %v1505_v9 = vld [vmem:[%s1481_s7] sm:$0xff]  ;;  %v1320_v11 = vmov 3  }
  0x39   : > { %327 = vperm.xlu0 %1083, %v1495_v1   ;;  %1085 = vset.pattern.permute.xlu1 %v1318_v4  ;;  %v1508_v10 = vld [vmem:[%s1481_s7 + $0x8] sm:$0xff]  ;;  %vm362_vm0 = vcmask 1043456   ;;  %v1321_v21 = vmov 5   ;;  %v983_v24 = vld [vmem:[%s1907_s3] sm:$0xff]  ;;  %vm358_vm1 = vcmask 64512   ;;  %v1322_v25 = vmov 6  }
  0x3a   : > { %1086 = vset.pattern.permute.xlu2 %v1319_v5  ;;  %345 = vperm.xlu1 %1085, %v1495_v1   ;;  %v1323_v26 = vmov 7   ;;  %v1324_v27 = vmov 8   ;;  %s1325_s19 = smov 17   ;;  %s1326_s25 = smov 113   ;;  %v1616_v60 = vand.u32 127, %v429_v58  ;;  %v1618_v61 = vld [vmem:[#allocation5] sm:$0xff] }
  0x3b   : > { %409 = vperm.xlu2 %1086, %v401_v3   ;;  %s1327_s26 = smov 1   ;;  %s1328_s27 = smov 16   ;;  %v1620_v62 = vld [vmem:[#allocation5 + $0x8] sm:$0xff]  ;;  %vm804_vm10 = vcmask 261120  }
  0x3c   : > { %s1329_s8 = smov 112   ;;  %s1330_s16 = smov 111   ;;  %vm606_vm2 = vcmp.lt.s32.totalorder %v1616_v60, 113  ;;  %vm431_vm3 = vcmp.lt.s32.totalorder %v1616_v60, 17  ;;  %vm466_vm4 = vcmp.lt.s32.totalorder %v1616_v60, 16  ;;  %vm501_vm5 = vcmp.lt.s32.totalorder %v1616_v60, 15 }
  0x3d   : > { %s1331_s14 = smov 15   ;;  %s1332_s17 = smov 127   ;;  %vm536_vm6 = vcmp.lt.s32.totalorder %v1616_v60, 1  ;;  %vm641_vm7 = vcmp.lt.s32.totalorder %v1616_v60, 112  ;;  %vm676_vm8 = vcmp.lt.s32.totalorder %v1616_v60, 111  ;;  %vm571_vm9 = vcmp.lt.s32.totalorder %v1616_v60, 127 }
  0x3e   : > { %s984_s7 = sshll.u32 %s1392_s28, 4  ;;  %s839_s28 = scalar_lea.sflag [#allocation4], %s1475_s12 }
  0x41   : > { %1084 = vset.pattern.permute.xlu0 %v1317_v2 }
  0x42   : > { %333 = vperm.xlu0 %1084, %v1495_v1   ;;  %350 = vperm.xlu1 %1085, %v1501_v7  }
  0x43   : > { %414 = vperm.xlu2 %1086, %v402_v6  }
  0x4a   : > { %1088 = vset.pattern.permute.xlu0 %v1316_v0  ;;  %1093 = vset.pattern.permute.xlu1 %v1320_v11 }
  0x4b   : > { %447 = vperm.xlu0 %1088, %v402_v6   ;;  %1087 = vset.pattern.permute.xlu2 %v1316_v0 }
  0x4c   : > { %552 = vperm.xlu1 %1093, %v402_v6   ;;  %443 = vperm.xlu2 %1087, %v401_v3  }
  0x53   : > { %1089 = vset.pattern.permute.xlu0 %v1317_v2  ;;  %v1912_v2 = vperm.slane %v1618_v61, 6 }
  0x54   : > { %478 = vperm.xlu0 %1089, %v401_v3   ;;  %1094 = vset.pattern.permute.xlu1 %v1321_v21 }
  0x55   : > { %1090 = vset.pattern.permute.xlu2 %v1318_v4  ;;  %583 = vperm.xlu1 %1094, %v401_v3  }
  0x56   : > { %513 = vperm.xlu2 %1090, %v401_v3  }
  0x5c   : > { %482 = vperm.xlu0 %1089, %v402_v6  }
  0x5d   : > { %1096 = vset.pattern.permute.xlu1 %v1322_v25 }
  0x5e   : > { %1095 = vset.pattern.permute.xlu2 %v1321_v21  ;;  %618 = vperm.xlu1 %1096, %v401_v3  }
  0x5f   : > { %587 = vperm.xlu2 %1095, %v402_v6  }
  0x64   : > { %1091 = vset.pattern.permute.xlu0 %v1318_v4 }
  0x65   : > { %517 = vperm.xlu0 %1091, %v402_v6  }
  0x66   : > { %1098 = vset.pattern.permute.xlu1 %v1323_v26 }
  0x67   : > { %1097 = vset.pattern.permute.xlu2 %v1322_v25  ;;  %653 = vperm.xlu1 %1098, %v401_v3  }
  0x68   : > { %622 = vperm.xlu2 %1097, %v402_v6  }
  0x6d   : > { %1092 = vset.pattern.permute.xlu0 %v1320_v11 }
  0x6e   : > { %548 = vperm.xlu0 %1092, %v401_v3  }
  0x6f   : > { %1101 = vset.pattern.permute.xlu1 %v1324_v27 }
  0x70   : > { %1099 = vset.pattern.permute.xlu2 %v1323_v26  ;;  %692 = vperm.xlu1 %1101, %v402_v6  }
  0x71   : > { %657 = vperm.xlu2 %1099, %v402_v6  }
  0x76   : > { %1100 = vset.pattern.permute.xlu0 %v1324_v27 }
  0x77   : > { %688 = vperm.xlu0 %1100, %v401_v3   ;;  %v1911_v3 = vperm.slane %v1620_v62, 6 }
  0x78   : > { %1102 = vset.pattern.permute.xlu1 %v1323_v26 }
  0x79   : > { %704 = vperm.xlu2 %1099, %v1495_v1   ;;  %708 = vperm.xlu1 %1102, %v1501_v7  }
  0x7f   : > { %1104 = vset.pattern.permute.xlu0 %v1321_v21 }
  0x81   : > { %1103 = vset.pattern.permute.xlu2 %v1321_v21  ;;  %1105 = vset.pattern.permute.xlu1 %v1322_v25 }
  0x95   : > { %v1539_v35 = vpop.permute.xlu2 %409 }
  0x9d   : > { %v1546_v36 = vpop.permute.xlu2 %414 }
  0xa6   : > { %v1557_v44 = vpop.permute.xlu2 %443 }
  0xab   : > { %v328_v8 = vpop.permute.xlu0 %327 }
  0xac   : > { %v330_v12 = vmul.f32 %v328_v8, %v1505_v9  ;;  %v331_v13 = vmul.f32 %v328_v8, %v1508_v10  ;;  %v346_v28 = vpop.permute.xlu1 %345 }
  0xb0   : > { %v1567_v45 = vpop.permute.xlu2 %513 }
  0xb4   : > { %v334_v14 = vpop.permute.xlu0 %333  ;;  %v351_v39 = vpop.permute.xlu1 %350 }
  0xb5   : > { %v336_v15 = vadd.f32 %v334_v14, %v330_v12  ;;  %v337_v16 = vadd.f32 %v334_v14, %v331_v13 }
  0xb7   : > { %v338_v17 = vmax.f32 %v336_v15, 0.0  ;;  %v339_v18 = vmax.f32 %v337_v16, 0.0 }
  0xb9   : > { %v342_v19 = vpack.c.bf16 %v338_v17, %v338_v17  ;;  %v343_v20 = vpack.c.bf16 %v339_v18, %v339_v18  ;;  %v1575_v46 = vpop.permute.xlu2 %587 }
  0xbb   : > { %v364_v22 = vsel %vm362_vm0, %v342_v19, 0  ;;  %v367_v23 = vsel %vm362_vm0, %v343_v20, 0  ;;  %v436_v19 = vperm.slane %v1618_v61, 0  ;;  %v437_v20 = vperm.slane %v1620_v62, 0 }
  0xbc   : > { %376 = vmatpush.bf16.msra.mxu0 %v364_v22  ;;  %390 = vmatpush.bf16.msra.mxu1 %v367_v23 }
  0xbd   : > { %v1577_v47 = vpop.permute.xlu0 %447 }
  0xbe   : > { %v1579_v48 = vpop.permute.xlu1 %552 }
  0xbf   : > { %973 = vmatmul.msk.bf16.vlgmr.msra.gmra.mxu0 %vm358_vm1, %v983_v24  ;;  %974 = vmatmul.msk.bf16.vlgmr.msra.gmra.mxu1 %vm358_vm1, %v983_v24 }
  0xc2   : > { %v1584_v49 = vpop.permute.xlu2 %622 }
  0xc6   : > { %v1587_v50 = vpop.permute.xlu0 %478 }
  0xc7   : > { %v1592_v51 = vpop.permute.xlu1 %583 }
  0xcb   : > { %v1595_v52 = vpop.permute.xlu2 %657 }
  0xce   : > { %v1602_v53 = vpop.permute.xlu0 %482 }
  0xd0   : > { %v619_v54 = vpop.permute.xlu1 %618 }
  0xd3   : > { %v1605_v55 = vpop.permute.xlu2 %704 }
  0xd7   : > { %v1609_v56 = vpop.permute.xlu0 %517 }
  0xd9   : > { %v1611_v57 = vpop.permute.xlu1 %653 }
  0xe0   : > { %v1622_v63 = vpop.permute.xlu0 %548 }
  0xe2   : > { %v1624_v0 = vpop.permute.xlu1 %692 }
  0xe9   : > { %v1645_v16 = vpop.permute.xlu0 %688 }
  0xeb   : > { %v1649_v17 = vpop.permute.xlu1 %708 }
 0x13c   : > { %v378_v29 = vpop.f32.mrf.mxu0  ;;  %v392_v30 = vpop.f32.mrf.mxu1 }
 0x13d   : > { %v379_v31 = vadd.f32 %v378_v29, %v346_v28  ;;  %v393_v32 = vadd.f32 %v392_v30, %v346_v28 }
 0x13f   : > { %v1524_v33 = vmax.f32 %v379_v31, 0.0  ;;  %v1526_v34 = vmax.f32 %v393_v32, 0.0 }
 0x141   : > { %425 = vrot.lane.b32.xlu0 %v1526_v34, %s1325_s19  ;;  %598 = vrot.lane.b32.xlu2 %v1524_v33, %s1326_s25  ;;  %v417_v26 = vmul.f32 %v1539_v35, %v1524_v33  ;;  %v418_v28 = vmul.f32 %v1539_v35, %v1526_v34  ;;  %v471_v35 = vperm.slane %v1618_v61, 1 }
 0x142   : > { %421 = vrot.lane.b32.xlu1 %v1524_v33, %s1325_s19 }
 0x144   : > { %v380_v37 = vpop.f32.mrf.mxu0  ;;  %v394_v38 = vpop.f32.mrf.mxu1 }
 0x145   : > { %v381_v40 = vadd.f32 %v380_v37, %v351_v39  ;;  %v395_v41 = vadd.f32 %v394_v38, %v351_v39 }
 0x147   : > { %v1553_v42 = vmax.f32 %v381_v40, 0.0  ;;  %v1555_v43 = vmax.f32 %v395_v41, 0.0  ;;  %v472_v40 = vperm.slane %v1620_v62, 1 }
 0x149   : > { %532 = vrot.lane.b32.xlu0 %v1526_v34, %s1327_s26  ;;  %602 = vrot.lane.b32.xlu2 %v1526_v34, %s1326_s25 }
 0x14a   : > { %458 = vrot.lane.b32.xlu1 %v1524_v33, %s1328_s27 }
 0x151   : > { %633 = vrot.lane.b32.xlu0 %v1524_v33, %s1329_s8  ;;  %637 = vrot.lane.b32.xlu2 %v1526_v34, %s1329_s8 }
 0x152   : > { %462 = vrot.lane.b32.xlu1 %v1526_v34, %s1328_s27 }
 0x159   : > { %668 = vrot.lane.b32.xlu0 %v1524_v33, %s1330_s16  ;;  %672 = vrot.lane.b32.xlu2 %v1526_v34, %s1330_s16 }
 0x15a   : > { %493 = vrot.lane.b32.xlu1 %v1524_v33, %s1331_s14 }
 0x161   : > { %604 = vrot.lane.b32.xlu0 %v1555_v43, %s1326_s25  ;;  %423 = vrot.lane.b32.xlu2 %v1553_v42, %s1325_s19 }
 0x162   : > { %497 = vrot.lane.b32.xlu1 %v1526_v34, %s1331_s14 }
 0x169   : > { %639 = vrot.lane.b32.xlu0 %v1555_v43, %s1329_s8  ;;  %460 = vrot.lane.b32.xlu2 %v1553_v42, %s1328_s27 }
 0x16a   : > { %528 = vrot.lane.b32.xlu1 %v1524_v33, %s1327_s26 }
 0x171   : > { %674 = vrot.lane.b32.xlu0 %v1555_v43, %s1330_s16  ;;  %464 = vrot.lane.b32.xlu2 %v1555_v43, %s1328_s27 }
 0x172   : > { %563 = vrot.lane.b32.xlu1 %v1524_v33, %s1332_s17 }
 0x179   : > { %495 = vrot.lane.b32.xlu2 %v1553_v42, %s1331_s14  ;;  %752 = vperm.xlu0 %1104, %v1501_v7  }
 0x17a   : > { %567 = vrot.lane.b32.xlu1 %v1526_v34, %s1332_s17 }
 0x181   : > { %499 = vrot.lane.b32.xlu2 %v1555_v43, %s1331_s14  ;;  %1109 = vset.pattern.permute.xlu0 %v1319_v5 }
 0x182   : > { %427 = vrot.lane.b32.xlu1 %v1555_v43, %s1325_s19  ;;  %732 = vperm.xlu0 %1109, %v1495_v1   ;;  %s850_s19 = scalar_lea.hbm %s1910_s6, %s984_s7 }
 0x183   : > { %s854_s27 = sshll.u32 %s850_s19, 4  ;;  %s855_s27 = int_to_ptr.hbm [resolvable:$true] %s854_s27 }
 0x189   : > { %530 = vrot.lane.b32.xlu2 %v1553_v42, %s1327_s26 }
 0x18a   : > { %534 = vrot.lane.b32.xlu1 %v1555_v43, %s1327_s26  ;;  %1112 = vset.pattern.permute.xlu0 %v1324_v27 }
 0x191   : > { %565 = vrot.lane.b32.xlu2 %v1553_v42, %s1332_s17 }
 0x192   : > { %600 = vrot.lane.b32.xlu1 %v1553_v42, %s1326_s25  ;;  %s319_s25 = scalar_lea.vmem [#allocation10], %s964_s20 }
 0x193   : > { %s852_s26 = sshll.u32 %s319_s25, 4  ;;  %s853_s26 = int_to_ptr.vmem [resolvable:$true] %s852_s26 }
 0x199   : > { %569 = vrot.lane.b32.xlu2 %v1555_v43, %s1332_s17  ;;  %s1253_s17 = scalar_lea.hbm %s1910_s6, 32 }
 0x19a   : > { %635 = vrot.lane.b32.xlu1 %v1553_v42, %s1329_s8  ;;  %s1247_s8 = sshra.s32 %s855_s27, 4  ;;  %s1248_s8 = int_to_ptr.hbm [resolvable:$true] %s1247_s8 }
 0x19b   : > { %v599_v59 = vpop.permute.xlu2 %598  ;;  %p1254_p12 = scmp.lt.s32.totalorder %s1248_s8, %s1910_s6 }
 0x1a1   : > { %748 = vperm.xlu2 %1103, %v1495_v1  }
 0x1a2   : > { %670 = vrot.lane.b32.xlu1 %v1553_v42, %s1330_s16  ;;  %s1249_s16 = scalar_lea.hbm %s1248_s8, 16 }
 0x1a3   : > { %v603_v4 = vpop.permute.xlu2 %602  ;;  %p1250_p1 = scmp.ne.s32.totalorder %s1248_s8, %s1249_s16  ;;  %p1255_p8 = scmp.lt.s32.totalorder %s1253_s17, %s1249_s16 }
 0x1a4   : > { %v607_v6 = vsel %vm606_vm2, %v599_v59, %v603_v4  ;;  %v609_v8 = vsel %vm606_vm2, %v603_v4, %v599_v59 }
 0x1a5   : > { %v613_v12 = vmul.f32 %v1912_v2, %v607_v6  ;;  %v614_v13 = vmul.f32 %v1911_v3, %v609_v8  ;;  %p1251_p3 = pnand %p1250_p1, %p1444_p13  ;;  %p1256_p7 = por %p1255_p8, %p1254_p12 }
 0x1a7   : > { %v1640_v14 = vmul.f32 %v619_v54, %v613_v12  ;;  %v1642_v15 = vmul.f32 %v619_v54, %v614_v13  ;;  %p1252_p5 = pneg %p1251_p3 }
 0x1a9   : > { %1106 = vset.pattern.permute.xlu2 %v1322_v25  ;;  %p1257_p9 = pnand %p1256_p7, %p1252_p5 }
 0x1aa   : > { %760 = vperm.xlu1 %1105, %v1495_v1   ;;  %764 = vperm.xlu2 %1106, %v1501_v7  }
 0x1ab   : > { %v1651_v18 = vpop.permute.xlu2 %637 }
 0x1b2   : > { %1107 = vset.pattern.permute.xlu1 %v1320_v11  ;;  %1108 = vset.pattern.permute.xlu2 %v1320_v11 }
 0x1b3   : > { %720 = vperm.xlu1 %1107, %v1495_v1   ;;  %v426_v21 = vpop.permute.xlu0 %425  ;;  %724 = vperm.xlu2 %1108, %v1501_v7   ;;  %v1672_v29 = vpop.permute.xlu2 %672 }
 0x1b4   : > { %v422_v22 = vpop.permute.xlu1 %421 }
 0x1b5   : > { %v432_v23 = vsel %vm431_vm3, %v422_v22, %v426_v21  ;;  %v434_v24 = vsel %vm431_vm3, %v426_v21, %v422_v22 }
 0x1b6   : > { %v438_v11 = vmul.f32 %v436_v19, %v434_v24  ;;  %v439_v25 = vmul.f32 %v437_v20, %v432_v23  ;;  %v506_v24 = vperm.slane %v1618_v61, 2 }
 0x1b8   : > { %v450_v30 = vmul.f32 %v1557_v44, %v438_v11  ;;  %v451_v31 = vmul.f32 %v1557_v44, %v439_v25  ;;  %v1915_v11 = vperm.slane %v1620_v62, 2 }
 0x1ba   : > { %v454_v32 = vadd.f32 %v450_v30, %v417_v26  ;;  %v455_v37 = vadd.f32 %v451_v31, %v418_v28  ;;  %v1914_v26 = vperm.slane %v1618_v61, 3  ;;  %v1913_v28 = vperm.slane %v1620_v62, 3 }
 0x1bb   : > { %1110 = vset.pattern.permute.xlu1 %v1319_v5  ;;  %1111 = vset.pattern.permute.xlu2 %v1324_v27  ;;  %v1680_v39 = vpop.permute.xlu2 %423  ;;  %v533_v12 = vpop.permute.xlu0 %532 }
 0x1bc   : > { %736 = vperm.xlu1 %1110, %v1501_v7   ;;  %v459_v38 = vpop.permute.xlu1 %458  ;;  %801 = vperm.xlu2 %1111, %v1495_v1  }
 0x1c3   : > { %v461_v4 = vpop.permute.xlu2 %460  ;;  %v634_v22 = vpop.permute.xlu0 %633 }
 0x1c4   : > { %v463_v41 = vpop.permute.xlu1 %462 }
 0x1c5   : > { %v467_v44 = vsel %vm466_vm4, %v459_v38, %v463_v41  ;;  %v469_v5 = vsel %vm466_vm4, %v463_v41, %v459_v38  ;;  %v1713_v41 = vld [vmem:[#allocation5 + $0x10] sm:$0xff] }
 0x1c6   : > { %v473_v7 = vmul.f32 %v471_v35, %v469_v5  ;;  %v474_v1 = vmul.f32 %v472_v40, %v467_v44  ;;  %v1715_v44 = vld [vmem:[#allocation5 + $0x18] sm:$0xff] }
 0x1c8   : > { %v485_v27 = vmul.f32 %v1587_v50, %v473_v7  ;;  %v486_v54 = vmul.f32 %v1587_v50, %v474_v1 }
 0x1ca   : > { %v489_v58 = vadd.f32 %v485_v27, %v454_v32  ;;  %v490_v59 = vadd.f32 %v486_v54, %v455_v37 }
 0x1cb   : > { %v465_v13 = vpop.permute.xlu2 %464  ;;  %v669_v1 = vpop.permute.xlu0 %668 }
 0x1cc   : > { %v494_v6 = vpop.permute.xlu1 %493  ;;  %v677_v2 = vsel %vm676_vm8, %v669_v1, %v1672_v29 }
 0x1d3   : > { %v496_v23 = vpop.permute.xlu2 %495 }
 0x1d4   : > { %v498_v8 = vpop.permute.xlu1 %497 }
 0x1d5   : > { %v502_v50 = vsel %vm501_vm5, %v494_v6, %v498_v8  ;;  %v504_v25 = vsel %vm501_vm5, %v498_v8, %v494_v6  ;;  %v576_v8 = vperm.slane %v1618_v61, 5 }
 0x1d6   : > { %v508_v37 = vmul.f32 %v506_v24, %v504_v25  ;;  %v509_v38 = vmul.f32 %v1915_v11, %v502_v50  ;;  %v1916_v50 = vperm.slane %v1620_v62, 7  ;;  %v681_v25 = vperm.slane %v1713_v41, 0 }
 0x1d8   : > { %v520_v27 = vmul.f32 %v1567_v45, %v508_v37  ;;  %v521_v54 = vmul.f32 %v1567_v45, %v509_v38  ;;  %v644_v45 = vsel %vm641_vm7, %v1651_v18, %v634_v22 }
 0x1db   : > { %v500_v6 = vpop.permute.xlu2 %499 }
 0x1dc   : > { %v529_v21 = vpop.permute.xlu1 %528 }
 0x1dd   : > { %v537_v31 = vsel %vm536_vm6, %v529_v21, %v533_v12  ;;  %v539_v32 = vsel %vm536_vm6, %v533_v12, %v529_v21  ;;  %v577_v12 = vperm.slane %v1620_v62, 5  ;;  %v646_v21 = vperm.slane %v1618_v61, 7 }
 0x1de   : > { %v543_v5 = vmul.f32 %v1914_v26, %v539_v32  ;;  %v544_v7 = vmul.f32 %v1913_v28, %v537_v31  ;;  %v682_v31 = vperm.slane %v1715_v44, 0  ;;  %v642_v32 = vsel %vm641_vm7, %v634_v22, %v1651_v18 }
 0x1df   : > { %v679_v28 = vsel %vm676_vm8, %v1672_v29, %v669_v1  ;;  %v524_v18 = vadd.f32 %v520_v27, %v489_v58  ;;  %v525_v22 = vadd.f32 %v521_v54, %v490_v59  ;;  %v649_v29 = vmul.f32 %v1916_v50, %v644_v45 }
 0x1e0   : > { %v555_v37 = vmul.f32 %v1622_v63, %v543_v5  ;;  %v556_v38 = vmul.f32 %v1622_v63, %v544_v7  ;;  %v648_v7 = vmul.f32 %v646_v21, %v642_v32  ;;  %v468_v1 = vsel %vm466_vm4, %v461_v4, %v465_v13 }
 0x1e1   : > { %v684_v27 = vmul.f32 %v682_v31, %v679_v28  ;;  %v661_v50 = vmul.f32 %v1611_v57, %v649_v29 }
 0x1e2   : > { %v559_v58 = vadd.f32 %v555_v37, %v524_v18  ;;  %v560_v59 = vadd.f32 %v556_v38, %v525_v22  ;;  %v660_v45 = vmul.f32 %v1611_v57, %v648_v7  ;;  %v1923_v7 = vperm.slane %v1620_v62, 2 }
 0x1e3   : > { %v531_v37 = vpop.permute.xlu2 %530  ;;  %v696_v22 = vmul.f32 %v1645_v16, %v684_v27 }
 0x1e4   : > { %v564_v30 = vpop.permute.xlu1 %563 }
 0x1eb   : > { %v566_v27 = vpop.permute.xlu2 %565 }
 0x1ec   : > { %v568_v3 = vpop.permute.xlu1 %567 }
 0x1ed   : > { %v572_v26 = vsel %vm571_vm9, %v564_v30, %v568_v3  ;;  %v574_v11 = vsel %vm571_vm9, %v568_v3, %v564_v30  ;;  %v470_v3 = vsel %vm466_vm4, %v465_v13, %v461_v4  ;;  %v476_v13 = vmul.f32 %v472_v40, %v468_v1 }
 0x1ee   : > { %v578_v63 = vmul.f32 %v576_v8, %v572_v26  ;;  %v579_v5 = vmul.f32 %v577_v12, %v574_v11  ;;  %v683_v11 = vmul.f32 %v681_v25, %v677_v2  ;;  %v475_v4 = vmul.f32 %v471_v35, %v470_v3 }
 0x1ef   : > { %v505_v2 = vsel %vm501_vm5, %v500_v6, %v496_v23  ;;  %v488_v3 = vmul.f32 %v1602_v53, %v476_v13  ;;  %v1924_v13 = vperm.slane %v1618_v61, 3 }
 0x1f0   : > { %v590_v30 = vmul.f32 %v1592_v51, %v578_v63  ;;  %v591_v26 = vmul.f32 %v1592_v51, %v579_v5  ;;  %v503_v51 = vsel %vm501_vm5, %v496_v23, %v500_v6  ;;  %v695_v57 = vmul.f32 %v1645_v16, %v683_v11 }
 0x1f1   : > { %v419_v63 = vmul.f32 %v1546_v36, %v1553_v42  ;;  %v420_v16 = vmul.f32 %v1546_v36, %v1555_v43  ;;  %v510_v5 = vmul.f32 %v506_v24, %v505_v2 }
 0x1f2   : > { %v594_v54 = vadd.f32 %v590_v30, %v559_v58  ;;  %v595_v32 = vadd.f32 %v591_v26, %v560_v59 }
 0x1f3   : > { %v522_v36 = vmul.f32 %v1609_v56, %v510_v5 }
 0x1f4   : > { %v629_v28 = vadd.f32 %v1640_v14, %v594_v54  ;;  %v630_v38 = vadd.f32 %v1642_v15, %v595_v32  ;;  %v428_v18 = vpop.permute.xlu1 %427 }
 0x1f5   : > { %v433_v35 = vsel %vm431_vm3, %v1680_v39, %v428_v18  ;;  %v435_v40 = vsel %vm431_vm3, %v428_v18, %v1680_v39  ;;  %v511_v39 = vmul.f32 %v1923_v7, %v503_v51  ;;  %v1927_v7 = vperm.slane %v1620_v62, 6 }
 0x1f6   : > { %v440_v23 = vmul.f32 %v436_v19, %v435_v40  ;;  %v441_v14 = vmul.f32 %v437_v20, %v433_v35  ;;  %v664_v15 = vadd.f32 %v660_v45, %v629_v28  ;;  %v665_v6 = vadd.f32 %v661_v50, %v630_v38  ;;  %v605_v45 = vpop.permute.xlu0 %604 }
 0x1f7   : > { %v487_v50 = vmul.f32 %v1602_v53, %v475_v4  ;;  %v523_v30 = vmul.f32 %v1609_v56, %v511_v39  ;;  %v570_v4 = vpop.permute.xlu2 %569  ;;  %v1925_v56 = vperm.slane %v1620_v62, 3 }
 0x1f8   : > { %v452_v29 = vmul.f32 %v1577_v47, %v440_v23  ;;  %v453_v19 = vmul.f32 %v1577_v47, %v441_v14  ;;  %v699_v1 = vadd.f32 %v695_v57, %v664_v15  ;;  %v700_v20 = vadd.f32 %v696_v22, %v665_v6 }
 0x1f9   : > { %v573_v18 = vsel %vm571_vm9, %v566_v27, %v570_v4  ;;  %v575_v57 = vsel %vm571_vm9, %v570_v4, %v566_v27 }
 0x1fa   : > { %v456_v58 = vadd.f32 %v452_v29, %v419_v63  ;;  %v457_v59 = vadd.f32 %v453_v19, %v420_v16  ;;  %v580_v6 = vmul.f32 %v576_v8, %v573_v18  ;;  %v581_v63 = vmul.f32 %v577_v12, %v575_v57 }
 0x1fb   : > { %v1926_v16 = vperm.slane %v1618_v61, 6 }
 0x1fc   : > { %v491_v24 = vadd.f32 %v487_v50, %v456_v58  ;;  %v492_v26 = vadd.f32 %v488_v3, %v457_v59  ;;  %v535_v11 = vpop.permute.xlu1 %534  ;;  %v1928_v50 = vperm.slane %v1620_v62, 7  ;;  %v592_v58 = vmul.f32 %v1575_v46, %v580_v6 }
 0x1fd   : > { %v538_v51 = vsel %vm536_vm6, %v531_v37, %v535_v11  ;;  %v540_v53 = vsel %vm536_vm6, %v535_v11, %v531_v37  ;;  %v593_v8 = vmul.f32 %v1575_v46, %v581_v63 }
 0x1fe   : > { %v526_v54 = vadd.f32 %v522_v36, %v491_v24  ;;  %v527_v32 = vadd.f32 %v523_v30, %v492_v26  ;;  %v545_v2 = vmul.f32 %v1924_v13, %v540_v53  ;;  %v546_v28 = vmul.f32 %v1925_v56, %v538_v51  ;;  %v640_v38 = vpop.permute.xlu0 %639 }
 0x1ff   : > { %v711_v36 = vadd.f32 %v1605_v55, %v699_v1  ;;  %v712_v30 = vadd.f32 %v1605_v55, %v700_v20 }
 0x200   : > { %v557_v35 = vmul.f32 %v1579_v48, %v545_v2  ;;  %v558_v40 = vmul.f32 %v1579_v48, %v546_v28 }
 0x201   : > { %v715_v20 = vmax.f32 %v711_v36, 0.0 }
 0x202   : > { %v561_v48 = vadd.f32 %v557_v35, %v526_v54  ;;  %v562_v29 = vadd.f32 %v558_v40, %v527_v32  ;;  %v749_v54 = vpop.permute.xlu2 %748 }
 0x203   : > { %v755_v13 = vmul.f32 %v749_v54, %v715_v20 }
 0x204   : > { %v601_v47 = vpop.permute.xlu1 %600  ;;  %v596_v26 = vadd.f32 %v592_v58, %v561_v48  ;;  %v597_v11 = vadd.f32 %v593_v8, %v562_v29 }
 0x205   : > { %v608_v22 = vsel %vm606_vm2, %v601_v47, %v605_v45  ;;  %v610_v37 = vsel %vm606_vm2, %v605_v45, %v601_v47  ;;  %v716_v45 = vmax.f32 %v712_v30, 0.0 }
 0x206   : > { %v615_v5 = vmul.f32 %v1926_v16, %v608_v22  ;;  %v616_v39 = vmul.f32 %v1927_v7, %v610_v37  ;;  %v675_v24 = vpop.permute.xlu0 %674 }
 0x207   : > { %v756_v2 = vmul.f32 %v749_v54, %v716_v45 }
 0x208   : > { %v627_v12 = vmul.f32 %v1584_v49, %v615_v5  ;;  %v628_v59 = vmul.f32 %v1584_v49, %v616_v39 }
 0x20a   : > { %v631_v49 = vadd.f32 %v627_v12, %v596_v26  ;;  %v632_v32 = vadd.f32 %v628_v59, %v597_v11  ;;  %v765_v37 = vpop.permute.xlu2 %764 }
 0x20c   : > { %v636_v23 = vpop.permute.xlu1 %635 }
 0x20d   : > { %v643_v14 = vsel %vm641_vm7, %v636_v23, %v640_v38  ;;  %v645_v15 = vsel %vm641_vm7, %v640_v38, %v636_v23 }
 0x20e   : > { %v650_v19 = vmul.f32 %v646_v21, %v643_v14  ;;  %v651_v3 = vmul.f32 %v1928_v50, %v645_v15  ;;  %v753_v28 = vpop.permute.xlu0 %752 }
 0x210   : > { %v662_v61 = vmul.f32 %v1595_v52, %v650_v19  ;;  %v663_v62 = vmul.f32 %v1595_v52, %v651_v3 }
 0x212   : > { %v666_v47 = vadd.f32 %v662_v61, %v631_v49  ;;  %v667_v52 = vadd.f32 %v663_v62, %v632_v32  ;;  %v725_v58 = vpop.permute.xlu2 %724 }
 0x213   : > { %v729_v59 = vmul.f32 %v725_v58, %v1553_v42  ;;  %v730_v36 = vmul.f32 %v725_v58, %v1555_v43  ;;  %v799_v42 = vld [vmem:[%s1909_s5] sm:$0xf] }
 0x214   : > { %v671_v21 = vpop.permute.xlu1 %670 }
 0x215   : > { %v678_v27 = vsel %vm676_vm8, %v671_v21, %v675_v24  ;;  %v680_v46 = vsel %vm676_vm8, %v675_v24, %v671_v21 }
 0x216   : > { %v685_v55 = vmul.f32 %v681_v25, %v678_v27  ;;  %v686_v1 = vmul.f32 %v682_v31, %v680_v46 }
 0x218   : > { %v697_v51 = vmul.f32 %v1624_v0, %v685_v55  ;;  %v698_v53 = vmul.f32 %v1624_v0, %v686_v1 }
 0x21a   : > { %v701_v4 = vadd.f32 %v697_v51, %v666_v47  ;;  %v702_v60 = vadd.f32 %v698_v53, %v667_v52  ;;  %v802_v43 = vpop.permute.xlu2 %801 }
 0x21c   : > { %v761_v56 = vpop.permute.xlu1 %760  ;;  %v713_v41 = vadd.f32 %v1649_v17, %v701_v4  ;;  %v714_v25 = vadd.f32 %v1649_v17, %v702_v60  ;;  %v733_v17 = vpop.permute.xlu0 %732 }
 0x21d   : > { %v767_v44 = vadd.f32 %v761_v56, %v755_v13  ;;  %v768_v31 = vadd.f32 %v761_v56, %v756_v2 }
 0x21e   : > { %v717_v38 = vmax.f32 %v713_v41, 0.0  ;;  %v718_v18 = vmax.f32 %v714_v25, 0.0 }
 0x21f   : > { %v771_v57 = vmax.f32 %v767_v44, 0.0  ;;  %v772_v22 = vmax.f32 %v768_v31, 0.0 }
 0x220   : > { %v757_v35 = vmul.f32 %v753_v28, %v717_v38  ;;  %v758_v40 = vmul.f32 %v753_v28, %v718_v18 }
 0x221   : > { %v777_v0 = vpack.c.bf16 %v772_v22, %v771_v57 }
 0x222   : > { %v769_v23 = vadd.f32 %v765_v37, %v757_v35  ;;  %v770_v14 = vadd.f32 %v765_v37, %v758_v40 }
 0x223   : > { %v791_v39 = vunpack.c.l.b16 %v777_v0  ;;  %v792_v29 = vunpack.c.h.b16 %v777_v0 }
 0x224   : > { %v773_v15 = vmax.f32 %v769_v23, 0.0  ;;  %v774_v6 = vmax.f32 %v770_v14, 0.0 }
 0x225   : > { %v721_v63 = vpop.permute.xlu1 %720 }
 0x226   : > { %v727_v16 = vmul.f32 %v721_v63, %v1524_v33  ;;  %v728_v5 = vmul.f32 %v721_v63, %v1526_v34  ;;  %v778_v7 = vpack.c.bf16 %v774_v6, %v773_v15 }
 0x228   : > { %v793_v48 = vunpack.c.l.b16 %v778_v7  ;;  %v794_v19 = vunpack.c.h.b16 %v778_v7  ;;  %v739_v50 = vadd.f32 %v733_v17, %v727_v16  ;;  %v740_v3 = vadd.f32 %v733_v17, %v728_v5 }
 0x22a   : > { %v795_v8 = vpack.c.b16 %v793_v48, %v791_v39  ;;  %v796_v12 = vpack.c.b16 %v794_v19, %v792_v29  ;;  %v743_v33 = vmax.f32 %v739_v50, 0.0  ;;  %v744_v30 = vmax.f32 %v740_v3, 0.0 }
 0x22c   : > { %814 = vmatpush.bf16.msra.mxu2 %v795_v8  ;;  %827 = vmatpush.bf16.msra.mxu3 %v796_v12  ;;  %v775_v11 = vpack.c.bf16 %v744_v30, %v743_v33 }
 0x22e   : > { %v737_v34 = vpop.permute.xlu1 %736  ;;  %v781_v27 = vunpack.c.l.b16 %v775_v11  ;;  %v782_v54 = vunpack.c.h.b16 %v775_v11 }
 0x22f   : > { %v741_v24 = vadd.f32 %v737_v34, %v729_v59  ;;  %v742_v26 = vadd.f32 %v737_v34, %v730_v36 }
 0x231   : > { %v745_v61 = vmax.f32 %v741_v24, 0.0  ;;  %v746_v62 = vmax.f32 %v742_v26, 0.0 }
 0x233   : > { %v776_v21 = vpack.c.bf16 %v746_v62, %v745_v61 }
 0x235   : > { %v783_v46 = vunpack.c.l.b16 %v776_v21  ;;  %v784_v49 = vunpack.c.h.b16 %v776_v21 }
 0x237   : > { %v785_v32 = vpack.c.b16 %v783_v46, %v781_v27  ;;  %v786_v55 = vpack.c.b16 %v784_v49, %v782_v54 }
 0x239   : > { %815 = vmatpush.bf16.msra.mxu2 %v785_v32  ;;  %828 = vmatpush.bf16.msra.mxu3 %v786_v55 }
 0x23c   : > { %975 = vmatmul.msk.bf16.vlgmr.msra.gmra.mxu2 %vm804_vm10, %v799_v42  ;;  %976 = vmatmul.msk.bf16.vlgmr.msra.gmra.mxu3 %vm804_vm10, %v799_v42 }
 0x2bf   : > { %v817_v1 = vpop.f32.mrf.mxu2  ;;  %v830_v20 = vpop.f32.mrf.mxu3 }
 0x2c0   : > { %v818_v45 = vadd.f32 %v817_v1, %v802_v43  ;;  %v831_v47 = vadd.f32 %v830_v20, %v802_v43 }
 0x2c2   : > { %v834_v52 = vadd.f32 %v818_v45, %v1505_v9  ;;  %v835_v51 = vadd.f32 %v831_v47, %v1508_v10 }
 0x2c4   : > { %836 = vst [vmem:[%s319_s25] sm:$0xff] %v834_v52 }
 0x2c5   : > { %837 = vst [vmem:[%s319_s25 + $0x8] sm:$0xff] %v835_v51 }
 0x2c6   : > { %1260 = shalt.err (!%p1257_p9)
}
 0x2c7   : > { %999 = dma.vmem_to_hbm [thread:$0]  (%p1444_p13), %s853_s26, 256, %s855_s27, %s839_s28   ;;  %v819_v9 = vpop.f32.mrf.mxu2  ;;  %v832_v10 = vpop.f32.mrf.mxu3 }
 0x2c8 PF: > { %s866_s12 = sand.u32 1, %s1295_s21   ;;  %p1929_p10 = scmp.ge.s32.totalorder %s1307_s24, 2 }
 0x2c9   : > { %s867_s7 = scalar_lea.sflag [#allocation4], %s866_s12 }
 0x2ca   : > { %p1016_p11 = pnand %p1929_p10, %p1449_p4 }
 0x2cc   : > { %p1017_p0 = pneg %p1016_p11 }
 0x2ce   : > { %1290 = dma.done.wait (%p1017_p0), %s867_s7, 256  }
 0x2cf   : > { %1292 = vsyncadd (%p1017_p0), %s867_s7, 4294967040  ;;  %p21_p13 = scmp.ge.s32.totalorder %s1424_s30, 4   ;;  %s1930_s21 = smov %s1299_s22 }
 0x2d0   : > { %s1931_s22 = smov %s1303_s23  ;;  %s1932_s23 = smov %s1436_s9 }
 0x2d1   : > { %s1933_s24 = smov %s1424_s30  ;;  %23 = sbr.rel (!%p21_p13) target bundleno = 7 (0x7), region = 101 }
 0x2d6   :  { %873 = vsyncpa [#allocation3], 1 }
 0x2d7   :  { %875 = vsyncpa [#allocation3 + $0x1], 1 }
 0x2d8   :  { %876 = vsyncpa [#allocation6], 1 }
 0x2d9   :  { %877 = vsyncpa [#allocation9], 1 }
 0x2da   :  { %878 = vsyncpa [#allocation4], 1 }
 0x2db   :  { %880 = vsyncpa [#allocation4 + $0x1], 1 }

</bundles_post_ra>
